<compile_context>
chip_gen: v7x
topology: tpu7x:2x2x1
jax: 0.10.0
libtpu: 0.0.40
codegen_flags: <defaults>
</compile_context>

<pallas_src>
import functools

import jax
import jax.numpy as jnp
from jax import lax
from jax.experimental import pallas as pl
from jax.experimental.pallas import tpu as pltpu

LANE = 128
_EPS = 1e-8  # F.normalize-style clamp on the row norm


def _round_up(x, m):
    return ((x + m - 1) // m) * m


def _pick_tile(n_pad, pref):
    t = min(pref, n_pad)
    while n_pad % t:
        t //= 2
    return t


def _pad2d(x, rows, cols):
    r, c = x.shape
    return jnp.pad(x, ((0, rows - r), (0, cols - c)))


# --------------------------- GCN encoder kernel ----------------------------

def _gcn_kernel(a_ref, x_ref, w_ref, b_ref, z_ref, acc_ref):
    k = pl.program_id(1)

    @pl.when(k == 0)
    def _():
        acc_ref[...] = jnp.zeros_like(acc_ref)

    acc_ref[...] += jnp.dot(a_ref[...], x_ref[...],
                            preferred_element_type=jnp.float32)

    @pl.when(k == pl.num_programs(1) - 1)
    def _():
        z = jnp.dot(acc_ref[...], w_ref[...],
                    preferred_element_type=jnp.float32) + b_ref[...]
        z_ref[...] = jnp.maximum(z, 0.0)


def gcn_encode(a_pad, x_pad, w_pad, b_pad, *, tm=256, tk=512):
    n_pad = a_pad.shape[0]
    f_pad = x_pad.shape[1]
    d_pad = w_pad.shape[1]
    tm = _pick_tile(n_pad, tm)
    tk = _pick_tile(n_pad, tk)
    return pl.pallas_call(
        _gcn_kernel,
        out_shape=jax.ShapeDtypeStruct((n_pad, d_pad), jnp.float32),
        grid=(n_pad // tm, n_pad // tk),
        in_specs=[
            pl.BlockSpec((tm, tk), lambda i, k: (i, k)),        # A tile streams
            pl.BlockSpec((tk, f_pad), lambda i, k: (k, 0)),     # X tile streams
            pl.BlockSpec((f_pad, d_pad), lambda i, k: (0, 0)),  # W resident
            pl.BlockSpec((1, d_pad), lambda i, k: (0, 0)),      # b resident
        ],
        out_specs=pl.BlockSpec((tm, d_pad), lambda i, k: (i, 0)),
        scratch_shapes=[pltpu.VMEM((tm, f_pad), jnp.float32)],
        compiler_params=pltpu.CompilerParams(
            dimension_semantics=("parallel", "arbitrary"),
            vmem_limit_bytes=48 * 1024 * 1024,
        ),
    )(a_pad, x_pad, w_pad, b_pad)


# ---------------------- projection head (+ row normalize) ------------------

def _project_kernel(z_ref, w1_ref, b1_ref, w2_ref, b2_ref, o_ref, *,
                    n_valid, tm, normalize):
    h = jnp.dot(z_ref[...], w1_ref[...],
                preferred_element_type=jnp.float32) + b1_ref[...]
    # ELU(alpha=1): x if x > 0 else exp(x) - 1
    h = jnp.where(h > 0.0, h, jnp.expm1(jnp.minimum(h, 0.0)))
    h = jnp.dot(h, w2_ref[...],
                preferred_element_type=jnp.float32) + b2_ref[...]
    if normalize:
        ss = jnp.sum(h * h, axis=1, keepdims=True)
        inv_norm = lax.rsqrt(jnp.maximum(ss, _EPS * _EPS))  # 1/max(||h||, eps)
        rows = pl.program_id(0) * tm + lax.broadcasted_iota(
            jnp.int32, h.shape, 0)
        # zero the padded rows so padded entries contribute exactly exp(0)=1
        h = jnp.where(rows < n_valid, h * inv_norm, 0.0)
    o_ref[...] = h


def project_head(z_pad, w1, b1, w2, b2, n_valid, *, normalize, tm=256):
    n_pad, d_pad = z_pad.shape
    p_pad = w1.shape[1]
    tm = _pick_tile(n_pad, tm)
    return pl.pallas_call(
        functools.partial(_project_kernel, n_valid=n_valid, tm=tm,
                          normalize=normalize),
        out_shape=jax.ShapeDtypeStruct((n_pad, d_pad), jnp.float32),
        grid=(n_pad // tm,),
        in_specs=[
            pl.BlockSpec((tm, d_pad), lambda i: (i, 0)),
            pl.BlockSpec((d_pad, p_pad), lambda i: (0, 0)),
            pl.BlockSpec((1, p_pad), lambda i: (0, 0)),
            pl.BlockSpec((p_pad, d_pad), lambda i: (0, 0)),
            pl.BlockSpec((1, d_pad), lambda i: (0, 0)),
        ],
        out_specs=pl.BlockSpec((tm, d_pad), lambda i: (i, 0)),
        compiler_params=pltpu.CompilerParams(
            dimension_semantics=("parallel",)),
    )(z_pad, w1, b1, w2, b2)


def _norm_kernel(h_ref, o_ref, *, n_valid, tm):
    h = h_ref[...]
    ss = jnp.sum(h * h, axis=1, keepdims=True)
    inv_norm = lax.rsqrt(jnp.maximum(ss, _EPS * _EPS))
    rows = pl.program_id(0) * tm + lax.broadcasted_iota(jnp.int32, h.shape, 0)
    o_ref[...] = jnp.where(rows < n_valid, h * inv_norm, 0.0)


def row_normalize(h_pad, n_valid, *, tm=256):
    n_pad, d_pad = h_pad.shape
    tm = _pick_tile(n_pad, tm)
    return pl.pallas_call(
        functools.partial(_norm_kernel, n_valid=n_valid, tm=tm),
        out_shape=jax.ShapeDtypeStruct((n_pad, d_pad), jnp.float32),
        grid=(n_pad // tm,),
        in_specs=[pl.BlockSpec((tm, d_pad), lambda i: (i, 0))],
        out_specs=pl.BlockSpec((tm, d_pad), lambda i: (i, 0)),
        compiler_params=pltpu.CompilerParams(
            dimension_semantics=("parallel",)),
    )(h_pad)


# ----------------------- fused NT-Xent loss (both dirs) ---------------------
# Packed per-row statistics (lane-dense (TM, 128) output blocks):
#   _LOGPOS : sim(z1_i, z2_i)/tau          (== log of the positive term)
#   _D1     : sum_j exp(sim(z1_i,z1_j)/tau) + sum_j exp(sim(z1_i,z2_j)/tau)
#             - exp(sim(z1_i,z1_i)/tau)    (direction-1 denominator, raw)
#   _D2P    : sum_j exp(sim(z2_i,z2_j)/tau) - exp(sim(z2_i,z2_i)/tau)
#             (direction-2 denominator minus the "between" sum, which comes
#              from the column-sum accumulator bsum)
_LOGPOS, _D1, _D2P = range(3)


def _fused_loss_kernel(z1_ref, z2_ref, z1b_ref, z2b_ref,
                       packed_ref, bsum_ref, *, inv_tau, tm):
    i = pl.program_id(0)

    z1_all = z1_ref[...]
    z2_all = z2_ref[...]
    z1b = z1b_ref[...]
    z2b = z2b_ref[...]

    # contract the last dim of both operands -> no materialized transpose.
    dn = (((1,), (1,)), ((), ()))
    e12 = jnp.exp(lax.dot_general(z1b, z2_all, dn,
                                  preferred_element_type=jnp.float32) * inv_tau)
    e11 = jnp.exp(lax.dot_general(z1b, z1_all, dn,
                                  preferred_element_type=jnp.float32) * inv_tau)
    e22 = jnp.exp(lax.dot_general(z2b, z2_all, dn,
                                  preferred_element_type=jnp.float32) * inv_tau)

    # diagonal terms as cheap row-wise dots (no (N,N) eye / iota machinery)
    s_pos = jnp.sum(z1b * z2b, axis=1, keepdims=True) * inv_tau   # log(pos)
    rd1 = jnp.exp(jnp.sum(z1b * z1b, axis=1, keepdims=True) * inv_tau)
    rd2 = jnp.exp(jnp.sum(z2b * z2b, axis=1, keepdims=True) * inv_tau)

    # (pos - between.diag() cancels in the torch denominator, so it is dropped)
    d1 = (jnp.sum(e11, axis=1, keepdims=True)
          + jnp.sum(e12, axis=1, keepdims=True) - rd1)
    d2p = jnp.sum(e22, axis=1, keepdims=True) - rd2

    lane = lax.broadcasted_iota(jnp.int32, (tm, LANE), 1)
    packed_ref[...] = (jnp.where(lane == _LOGPOS, s_pos, 0.0)
                       + jnp.where(lane == _D1, d1, 0.0)
                       + jnp.where(lane == _D2P, d2p, 0.0))

    # column sums of e12 == row sums of exp(sim(z2, z1)/tau): the "between"
    # term of the swapped direction, reusing the same matmul.  Accumulated
    # across row blocks in a resident output -> grid axis is "arbitrary".
    @pl.when(i == 0)
    def _():
        bsum_ref[...] = jnp.zeros_like(bsum_ref)

    bsum_ref[...] += jnp.sum(e12, axis=0, keepdims=True)


def fused_contrastive_losses(z1n_pad, z2n_pad, tau, n_valid, *, tm=256):
    """z1n_pad/z2n_pad: row-normalized, zero-padded (N_pad, D_pad). Returns l1, l2 (N,)."""
    n_pad, d_pad = z1n_pad.shape
    tm = _pick_tile(n_pad, tm)
    # TODO(synk): for very large N, additionally tile the "all nodes" operand
    # (second-level pipeline over column blocks) instead of keeping the full
    # z1/z2 resident in VMEM.
    packed, bsum = pl.pallas_call(
        functools.partial(_fused_loss_kernel, inv_tau=1.0 / float(tau), tm=tm),
        out_shape=(
            jax.ShapeDtypeStruct((n_pad, LANE), jnp.float32),
            jax.ShapeDtypeStruct((1, n_pad), jnp.float32),
        ),
        grid=(n_pad // tm,),
        in_specs=[
            pl.BlockSpec((n_pad, d_pad), lambda i: (0, 0)),   # full z1n resident
            pl.BlockSpec((n_pad, d_pad), lambda i: (0, 0)),   # full z2n resident
            pl.BlockSpec((tm, d_pad), lambda i: (i, 0)),      # z1n row tile
            pl.BlockSpec((tm, d_pad), lambda i: (i, 0)),      # z2n row tile
        ],
        out_specs=(
            pl.BlockSpec((tm, LANE), lambda i: (i, 0)),       # lane-dense stats
            pl.BlockSpec((1, n_pad), lambda i: (0, 0)),       # resident accumulator
        ),
        compiler_params=pltpu.CompilerParams(
            dimension_semantics=("arbitrary",),
            vmem_limit_bytes=48 * 1024 * 1024,
        ),
    )(z1n_pad, z2n_pad, z1n_pad, z2n_pad)

    # Each padded (all-zero) row/col contributes exp(0/tau)=1 to the raw sums.
    c = jnp.float32(n_pad - n_valid)
    log_pos = packed[:n_valid, _LOGPOS]
    d1 = packed[:n_valid, _D1]
    d2p = packed[:n_valid, _D2P]
    betw2 = bsum[0, :n_valid]

    l1 = jnp.log(d1 - 2.0 * c) - log_pos
    l2 = jnp.log(d2p + betw2 - 2.0 * c) - log_pos
    return l1, l2


# ------------------------------- glue / model -------------------------------

def build_norm_adj(edge_index, edge_weight, num_nodes):
    """Dense symmetrically-normalized adjacency with self-loops (plain-JAX glue)."""
    a = jnp.zeros((num_nodes, num_nodes), jnp.float32)
    a = a.at[edge_index[0], edge_index[1]].add(edge_weight)
    a = a + jnp.eye(num_nodes, dtype=jnp.float32)  # self loops
    deg = jnp.sum(a, axis=1)
    dinv = lax.rsqrt(jnp.maximum(deg, 1e-12))
    return a * dinv[:, None] * dinv[None, :]


def aug_feature_mask(x, edge_index, edge_weight):
    """Deterministic augmentor 1: zero out every other feature column (keeps edges)."""
    mask = (jnp.arange(x.shape[1]) % 2 == 0).astype(x.dtype)
    return x * mask[None, :], edge_index, edge_weight


def aug_scale(x, edge_index, edge_weight):
    """Deterministic augmentor 2: scale features and edge weights."""
    return x * 0.9, edge_index, edge_weight * 0.8


class GraceJax:
    """JAX/Pallas port of the PyTorch GRACE module (one-layer GCN encoder)."""

    def __init__(self, key, in_dim, output_dim, proj_dim, tau=0.5, batch_size=0):
        self.tau = float(tau)
        self.in_dim = in_dim
        self.out_dim = output_dim
        self.proj_dim = proj_dim
        self.batch_size = batch_size
        # TODO(synk): only the default all-ones hard_mask is supported by the
        # fused loss kernel (matches the module's own default behaviour).
        self.hard_mask = None

        self.f_pad = _round_up(in_dim, LANE)
        self.d_pad = _round_up(output_dim, LANE)
        self.p_pad = _round_up(max(proj_dim, 1), LANE)

        k_enc, k_b, k1, kb1, k2, kb2 = jax.random.split(key, 6)
        self.w_enc = jax.random.normal(k_enc, (in_dim, output_dim), jnp.float32) * (1.0 / jnp.sqrt(in_dim))
        self.b_enc = jax.random.normal(k_b, (1, output_dim), jnp.float32) * 0.01
        if proj_dim:
            self.w1 = jax.random.normal(k1, (output_dim, proj_dim), jnp.float32) * (1.0 / jnp.sqrt(output_dim))
            self.b1 = jax.random.normal(kb1, (1, proj_dim), jnp.float32) * 0.01
            self.w2 = jax.random.normal(k2, (proj_dim, output_dim), jnp.float32) * (1.0 / jnp.sqrt(proj_dim))
            self.b2 = jax.random.normal(kb2, (1, output_dim), jnp.float32) * 0.01
        else:
            self.w1 = self.b1 = self.w2 = self.b2 = None

        # zero-pad weights once to MXU / lane friendly sizes
        self.w_enc_p = _pad2d(self.w_enc, self.f_pad, self.d_pad)
        self.b_enc_p = _pad2d(self.b_enc, 1, self.d_pad)
        if proj_dim:
            self.w1_p = _pad2d(self.w1, self.d_pad, self.p_pad)
            self.b1_p = _pad2d(self.b1, 1, self.p_pad)
            self.w2_p = _pad2d(self.w2, self.p_pad, self.d_pad)
            self.b2_p = _pad2d(self.b2, 1, self.d_pad)

    # -- encoder ------------------------------------------------------------
    def _encode_with_adj(self, a, x):
        n = x.shape[0]
        n_pad = _round_up(n, LANE)
        a_pad = _pad2d(a, n_pad, n_pad)
        x_pad = _pad2d(x, n_pad, self.f_pad)
        z_pad = gcn_encode(a_pad, x_pad, self.w_enc_p, self.b_enc_p)
        return z_pad[:n, :self.out_dim]

    def encoder(self, x, edge_index, edge_weight):
        a = build_norm_adj(edge_index, edge_weight, x.shape[0])
        return self._encode_with_adj(a, x)

    def forward(self, x, edge_index, edge_weight=None):
        if edge_weight is None:
            edge_weight = jnp.ones((edge_index.shape[1],), jnp.float32)
        x1, ei1, ew1 = aug_feature_mask(x, edge_index, edge_weight)
        x2, ei2, ew2 = aug_scale(x, edge_index, edge_weight)
        n = x.shape[0]
        # aug1 leaves the graph untouched -> build A_hat once and reuse for z, z1.
        a = build_norm_adj(edge_index, edge_weight, n)
        a2 = build_norm_adj(ei2, ew2, n)  # rescaled edge weights -> different A_hat
        z = self._encode_with_adj(a, x)
        z1 = self._encode_with_adj(a, x1)
        z2 = self._encode_with_adj(a2, x2)
        return z, z1, z2

    # -- projection / loss ---------------------------------------------------
    def project(self, z):
        assert self.proj_dim != 0
        n = z.shape[0]
        n_pad = _round_up(n, LANE)
        z_pad = _pad2d(z, n_pad, self.d_pad)
        h = project_head(z_pad, self.w1_p, self.b1_p, self.w2_p, self.b2_p,
                         n, normalize=False)
        return h[:n, :self.out_dim]

    def _projected_normalized(self, z):
        n = z.shape[0]
        n_pad = _round_up(n, LANE)
        z_pad = _pad2d(z, n_pad, self.d_pad)
        if self.proj_dim != 0:
            return project_head(z_pad, self.w1_p, self.b1_p, self.w2_p,
                                self.b2_p, n, normalize=True)
        return row_normalize(z_pad, n)

    def loss(self, z1, z2, mean=True):
        # Projection + row-normalization run once per view; a single row-tiled
        # kernel produces the statistics of BOTH loss directions.  (The torch
        # batched_semi_loss path is mathematically identical to semi_loss for
        # the default all-ones mask, so batch_size>0 routes here as well.)
        h1n = self._projected_normalized(z1)
        h2n = self._projected_normalized(z2)
        l1, l2 = fused_contrastive_losses(h1n, h2n, self.tau, z1.shape[0])
        ret = (l1 + l2) * 0.5
        return ret.mean() if mean else ret.sum()

    def get_embedding(self, x, edge_index, edge_weight=None):
        if edge_weight is None:
            edge_weight = jnp.ones((edge_index.shape[1],), jnp.float32)
        return lax.stop_gradient(self.encoder(x, edge_index, edge_weight))


# ----------------------------------- main -----------------------------------

if __name__ == "__main__":
    key = jax.random.PRNGKey(0)
    k_x, k_e, k_m = jax.random.split(key, 3)

    N, IN_DIM, OUT_DIM, PROJ_DIM = 8, 16, 32, 16
    E = 24

    x = jax.random.normal(k_x, (N, IN_DIM), jnp.float32)
    edge_index = jax.random.randint(k_e, (2, E), 0, N, dtype=jnp.int32)
    edge_weight = jnp.ones((E,), jnp.float32)

    model = GraceJax(k_m, IN_DIM, OUT_DIM, PROJ_DIM, tau=0.5, batch_size=0)

    z, z1, z2 = model.forward(x, edge_index, edge_weight)
    loss_val = model.loss(z1, z2, mean=True)
    jax.block_until_ready((z, z1, z2, loss_val))

    # -------- pure-JAX reference (loose tol: MXU vs XLA matmul rounding) -----
    hp = lax.Precision.HIGHEST

    def ref_encode(a, xx):
        return jnp.maximum(
            jnp.dot(jnp.dot(a, xx, precision=hp), model.w_enc, precision=hp)
            + model.b_enc, 0.0)

    def ref_project(zz):
        h = jnp.dot(zz, model.w1, precision=hp) + model.b1
        h = jnp.where(h > 0, h, jnp.expm1(jnp.minimum(h, 0.0)))
        return jnp.dot(h, model.w2, precision=hp) + model.b2

    def ref_cos(a, b):
        an = a / jnp.maximum(jnp.linalg.norm(a, axis=1, keepdims=True), _EPS)
        bn = b / jnp.maximum(jnp.linalg.norm(b, axis=1, keepdims=True), _EPS)
        return jnp.dot(an, bn.T, precision=hp)

    def ref_semi_loss(h1, h2, tau):
        f = lambda s: jnp.exp(s / tau)
        between = f(ref_cos(h1, h2))
        refl = f(ref_cos(h1, h1))
        pos = jnp.diag(between)
        denom = (refl.sum(1) + between.sum(1) + pos
                 - jnp.diag(refl) - jnp.diag(between))
        return -jnp.log(pos / denom)

    a_r = build_norm_adj(edge_index, edge_weight, N)
    x1_r, _, _ = aug_feature_mask(x, edge_index, edge_weight)
    x2_r, ei2_r, ew2_r = aug_scale(x, edge_index, edge_weight)
    a2_r = build_norm_adj(ei2_r, ew2_r, N)
    z_r, z1_r, z2_r = ref_encode(a_r, x), ref_encode(a_r, x1_r), ref_encode(a2_r, x2_r)
    h1_r, h2_r = ref_project(z1_r), ref_project(z2_r)
    loss_r = (0.5 * (ref_semi_loss(h1_r, h2_r, model.tau)
                     + ref_semi_loss(h2_r, h1_r, model.tau))).mean()

    assert z.shape == (N, OUT_DIM) and z1.shape == (N, OUT_DIM) and z2.shape == (N, OUT_DIM)
    assert jnp.allclose(z, z_r, rtol=2e-2, atol=2e-2)
    assert jnp.allclose(z1, z1_r, rtol=2e-2, atol=2e-2)
    assert jnp.allclose(z2, z2_r, rtol=2e-2, atol=2e-2)
    assert jnp.isfinite(loss_val)
    assert jnp.allclose(loss_val, loss_r, rtol=2e-2, atol=2e-2)
    print("KERNEL_OK")
</pallas_src>

<mosaic_0001>
module attributes {stable_mosaic.version = 11 : i64} {
  func.func @_gcn_kernel(%arg0: i32, %arg1: i32, %arg2: memref<128x128xf32, #tpu.memory_space<vmem>>, %arg3: memref<128x128xf32, #tpu.memory_space<vmem>>, %arg4: memref<128x128xf32, #tpu.memory_space<vmem>>, %arg5: memref<1x128xf32, #tpu.memory_space<vmem>>, %arg6: memref<128x128xf32, #tpu.memory_space<vmem>>, %arg7: memref<128x128xf32, #tpu.memory_space<vmem>>) attributes {dimension_semantics = [#tpu.dimension_semantics<parallel>, #tpu.dimension_semantics<arbitrary>], iteration_bounds = array<i64: 1, 1>, scalar_prefetch = 0 : i64, scratch_operands = 1 : i64, tpu.core_type = #tpu.core_type<tc>, window_params = [{transform_indices = @transform_0, window_bounds = array<i64: 128, 128>}, {transform_indices = @transform_1, window_bounds = array<i64: 128, 128>}, {pipeline_mode = #tpu.pipeline_mode<synchronous>, transform_indices = @transform_2, window_bounds = array<i64: 128, 128>}, {pipeline_mode = #tpu.pipeline_mode<synchronous>, transform_indices = @transform_3, window_bounds = array<i64: 1, 128>}, {transform_indices = @transform_4, window_bounds = array<i64: 128, 128>}]} {
    %c0_i32 = arith.constant 0 : i32
    %0 = arith.cmpi eq, %arg1, %c0_i32 : i32
    %1 = arith.extui %0 : i1 to i32
    %c0_i32_0 = arith.constant 0 : i32
    %2 = arith.cmpi ne, %1, %c0_i32_0 : i32
    scf.if %2 {
      %cst_10 = arith.constant 0.000000e+00 : f32
      %12 = vector.broadcast %cst_10 : f32 to vector<128x128xf32>
      %c0_11 = arith.constant 0 : index
      %c0_12 = arith.constant 0 : index
      %13 = vector.load %arg7[%c0_11, %c0_12] : memref<128x128xf32, #tpu.memory_space<vmem>>, vector<128x128xf32>
      tpu.vector_store %arg7[%c0_11, %c0_12], %12 {strides = array<i32>} : memref<128x128xf32, #tpu.memory_space<vmem>>, vector<128x128xf32>,
    } else {
    }
    %c0 = arith.constant 0 : index
    %c0_1 = arith.constant 0 : index
    %3 = vector.load %arg7[%c0, %c0_1] : memref<128x128xf32, #tpu.memory_space<vmem>>, vector<128x128xf32>
    %c0_2 = arith.constant 0 : index
    %c0_3 = arith.constant 0 : index
    %4 = vector.load %arg2[%c0_2, %c0_3] : memref<128x128xf32, #tpu.memory_space<vmem>>, vector<128x128xf32>
    %c0_4 = arith.constant 0 : index
    %c0_5 = arith.constant 0 : index
    %5 = vector.load %arg3[%c0_4, %c0_5] : memref<128x128xf32, #tpu.memory_space<vmem>>, vector<128x128xf32>
    %cst = arith.constant dense<0.000000e+00> : vector<128x128xf32>
    %6 = tpu.matmul %4, %5, %cst {dimension_numbers = #tpu.dot_dimension_numbers<[1], [0], [0], [1], [0, 0, 1, 1], [], []>} : vector<128x128xf32>, vector<128x128xf32>, vector<128x128xf32> -> vector<128x128xf32>
    %7 = arith.addf %3, %6 : vector<128x128xf32>
    %c0_6 = arith.constant 0 : index
    %c0_7 = arith.constant 0 : index
    %8 = vector.load %arg7[%c0_6, %c0_7] : memref<128x128xf32, #tpu.memory_space<vmem>>, vector<128x128xf32>
    tpu.vector_store %arg7[%c0_6, %c0_7], %7 {strides = array<i32>} : memref<128x128xf32, #tpu.memory_space<vmem>>, vector<128x128xf32>,
    %c0_i32_8 = arith.constant 0 : i32
    %9 = arith.cmpi eq, %arg1, %c0_i32_8 : i32
    %10 = arith.extui %9 : i1 to i32
    %c0_i32_9 = arith.constant 0 : i32
    %11 = arith.cmpi ne, %10, %c0_i32_9 : i32
    scf.if %11 {
      %c0_10 = arith.constant 0 : index
      %c0_11 = arith.constant 0 : index
      %12 = vector.load %arg7[%c0_10, %c0_11] : memref<128x128xf32, #tpu.memory_space<vmem>>, vector<128x128xf32>
      %c0_12 = arith.constant 0 : index
      %c0_13 = arith.constant 0 : index
      %13 = vector.load %arg4[%c0_12, %c0_13] : memref<128x128xf32, #tpu.memory_space<vmem>>, vector<128x128xf32>
      %cst_14 = arith.constant dense<0.000000e+00> : vector<128x128xf32>
      %14 = tpu.matmul %12, %13, %cst_14 {dimension_numbers = #tpu.dot_dimension_numbers<[1], [0], [0], [1], [0, 0, 1, 1], [], []>} : vector<128x128xf32>, vector<128x128xf32>, vector<128x128xf32> -> vector<128x128xf32>
      %c0_15 = arith.constant 0 : index
      %c0_16 = arith.constant 0 : index
      %15 = vector.load %arg5[%c0_15, %c0_16] : memref<1x128xf32, #tpu.memory_space<vmem>>, vector<1x128xf32>
      %16 = vector.broadcast %15 : vector<1x128xf32> to vector<128x128xf32>
      %17 = arith.addf %14, %16 : vector<128x128xf32>
      %cst_17 = arith.constant 0.000000e+00 : f32
      %18 = vector.broadcast %cst_17 : f32 to vector<128x128xf32>
      %19 = arith.maximumf %17, %18 : vector<128x128xf32>
      %c0_18 = arith.constant 0 : index
      %c0_19 = arith.constant 0 : index
      %20 = vector.load %arg6[%c0_18, %c0_19] : memref<128x128xf32, #tpu.memory_space<vmem>>, vector<128x128xf32>
      tpu.vector_store %arg6[%c0_18, %c0_19], %19 {strides = array<i32>} : memref<128x128xf32, #tpu.memory_space<vmem>>, vector<128x128xf32>,
    } else {
    }
    return
  }
  func.func @transform_0(%arg0: i32, %arg1: i32) -> (i32, i32) {
    %c0_i32 = arith.constant 0 : i32
    return %arg0, %arg1 : i32, i32
  }
  func.func @transform_1(%arg0: i32, %arg1: i32) -> (i32, i32) {
    %c0_i32 = arith.constant 0 : i32
    %c0_i32_0 = arith.constant 0 : i32
    return %arg1, %c0_i32 : i32, i32
  }
  func.func @transform_2(%arg0: i32, %arg1: i32) -> (i32, i32) {
    %c0_i32 = arith.constant 0 : i32
    %c0_i32_0 = arith.constant 0 : i32
    %c0_i32_1 = arith.constant 0 : i32
    return %c0_i32, %c0_i32_0 : i32, i32
  }
  func.func @transform_3(%arg0: i32, %arg1: i32) -> (i32, i32) {
    %c0_i32 = arith.constant 0 : i32
    %c0_i32_0 = arith.constant 0 : i32
    %c0_i32_1 = arith.constant 0 : i32
    return %c0_i32, %c0_i32_0 : i32, i32
  }
  func.func @transform_4(%arg0: i32, %arg1: i32) -> (i32, i32) {
    %c0_i32 = arith.constant 0 : i32
    %c0_i32_0 = arith.constant 0 : i32
    return %arg0, %c0_i32 : i32, i32
  }
}

</mosaic_0001>

<bundles_post_ra>
// kernel: tpu_custom_call.1
= control target key start
LH: loop header
LB: loop body
LE: loop exit
PB: predicated region body
PF: predicated region fallthrough
CT: control target
= control target key end

     0   :  { %9 = vsyncpa [#allocation4], 0  ;;  %s983_s0 = inlined_call_operand.hbm [shape: f32[128,128], index: 0, kind: input, shape index: {}]   ;;  %s984_s1 = inlined_call_operand.hbm [shape: f32[128,128], index: 1, kind: input, shape index: {}]   ;;  %s985_s2 = inlined_call_operand.hbm [shape: f32[128,128], index: 2, kind: input, shape index: {}]   ;;  %s986_s3 = inlined_call_operand.vmem [shape: f32[1,128], index: 3, kind: input, shape index: {}]   ;;  %s987_s4 = inlined_call_operand.hbm [shape: f32[128,128], index: 4, kind: output, shape index: {}]  }
   0x1   :  { %10 = vsyncpa [#allocation7], 0 }
   0x2   :  { %11 = vsyncpa [#allocation5], 0  ;;  %s882_s15 = smov [#allocation6]   ;;  %s883_s17 = smov [#allocation3]  }
   0x3   :  { %s29_s16 = sshll.u32 %s882_s15, 4  ;;  %s17_s18 = sshll.u32 %s883_s17, 4  ;;  %s30_s16 = int_to_ptr.vmem [resolvable:$true] %s29_s16  ;;  %s913_s18 = int_to_ptr.vmem [resolvable:$true] %s17_s18 }
   0x4   :  { %s788_s21 = scalar_lea.hbm %s984_s1, 2048 }
   0x5   :  { %p789_p0 = scmp.ne.s32.totalorder %s984_s1, %s788_s21  ;;  %p792_p1 = scmp.lt.u32.totalorder %s788_s21, %s984_s1 }
   0x7   :  { %p794_p2 = pnand %p792_p1, %p789_p0 }
   0x9   :  { %797 = shalt.err (!%p794_p2)
}
   0xa   :  { %s798_s26 = scalar_lea.vmem %s30_s16, 2048  ;;  %p803_p4 = scmp.lt.s32.totalorder %s30_s16, %s30_s16 }
   0xb   :  { %p799_p3 = scmp.ne.s32.totalorder %s30_s16, %s798_s26  ;;  %p804_p5 = scmp.lt.s32.totalorder %s798_s26, %s798_s26 }
   0xd   :  { %p805_p6 = por %p804_p5, %p803_p4 }
   0xf   :  { %p806_p7 = pnand %p805_p6, %p799_p3 }
  0x11   :  { %809 = shalt.err (!%p806_p7)
}
  0x12   :  { %s884_s27 = smov 128   ;;  %s885_s28 = smov 8  }
  0x13   :  { %35 = dma.hbm_to_vmem [thread:$0]  %s984_s1, 2048, %s30_s16, [#allocation7], %s884_s27, %s884_s27, %s885_s28  }
  0x14   :  { %s810_s7 = scalar_lea.hbm %s983_s0, 2048 }
  0x15   :  { %p811_p8 = scmp.ne.s32.totalorder %s983_s0, %s810_s7  ;;  %p814_p9 = scmp.lt.u32.totalorder %s810_s7, %s983_s0 }
  0x17   :  { %p816_p10 = pnand %p814_p9, %p811_p8 }
  0x19   :  { %819 = shalt.err (!%p816_p10)
}
  0x1a   :  { %s820_s12 = scalar_lea.vmem %s913_s18, 2048  ;;  %p825_p12 = scmp.lt.s32.totalorder %s913_s18, %s913_s18 }
  0x1b   :  { %p821_p11 = scmp.ne.s32.totalorder %s913_s18, %s820_s12  ;;  %p826_p13 = scmp.lt.s32.totalorder %s820_s12, %s820_s12 }
  0x1d   :  { %p827_p0 = por %p826_p13, %p825_p12 }
  0x1f   :  { %p828_p1 = pnand %p827_p0, %p821_p11 }
  0x21   :  { %831 = shalt.err (!%p828_p1)
}
  0x22   :  { %23 = dma.hbm_to_vmem [thread:$0]  %s983_s0, 2048, %s913_s18, [#allocation4], %s884_s27, %s884_s27, %s885_s28  }
  0x23   :  { %s886_s14 = smov [#allocation8]   ;;  %s832_s19 = scalar_lea.hbm %s985_s2, 2048 }
  0x24   :  { %s41_s15 = sshll.u32 %s886_s14, 4  ;;  %p833_p2 = scmp.ne.s32.totalorder %s985_s2, %s832_s19  ;;  %s42_s15 = int_to_ptr.vmem [resolvable:$true] %s41_s15 }
  0x25   :  { %p836_p3 = scmp.lt.u32.totalorder %s832_s19, %s985_s2 }
  0x27   :  { %p838_p4 = pnand %p836_p3, %p833_p2 }
  0x29   :  { %841 = shalt.err (!%p838_p4)
}
  0x2a   :  { %s842_s24 = scalar_lea.vmem %s42_s15, 2048  ;;  %p847_p6 = scmp.lt.s32.totalorder %s42_s15, %s42_s15 }
  0x2b   :  { %p843_p5 = scmp.ne.s32.totalorder %s42_s15, %s842_s24  ;;  %p848_p7 = scmp.lt.s32.totalorder %s842_s24, %s842_s24 }
  0x2d   :  { %p849_p8 = por %p848_p7, %p847_p6 }
  0x2f   :  { %p850_p9 = pnand %p849_p8, %p843_p5 }
  0x31   :  { %853 = shalt.err (!%p850_p9)
}
  0x32   :  { %47 = dma.hbm_to_vmem [thread:$0]  %s985_s2, 2048, %s42_s15, [#allocation7], %s884_s27, %s884_s27, %s885_s28  }
  0x33   :  { %876 = dma.done.wait [#allocation4], 2048  }
  0x34   :  { %877 = vsyncadd [#allocation4], 4294965248 }
  0x35   :  { %878 = dma.done.wait [#allocation7], 4096  }
  0x36   :  { %879 = vsyncadd [#allocation7], 4294963200  ;;  %v111_v0 = vld [vmem:[#allocation6] sm:$0xff]  ;;  %v112_v1 = vld [vmem:[#allocation6 + $0x8] sm:$0xff] }
  0x37   :  { %v113_v2 = vld [vmem:[#allocation6 + $0x10] sm:$0xff]  ;;  %v718_v3 = vpack.c.bf16 %v112_v1, %v111_v0  ;;  %v114_v4 = vld [vmem:[#allocation6 + $0x18] sm:$0xff]  ;;  %v115_v6 = vld [vmem:[#allocation6 + $0x20] sm:$0xff] }
  0x38   :  { %v722_v5 = vpack.c.bf16 %v114_v4, %v113_v2  ;;  %v116_v7 = vld [vmem:[#allocation6 + $0x28] sm:$0xff]  ;;  %v95_v9 = vld [vmem:[#allocation3] sm:$0xff]  ;;  %v117_v10 = vld [vmem:[#allocation6 + $0x30] sm:$0xff] }
  0x39   :  { %719 = vmatprep.subr.bf16.mxu0 %v718_v3  ;;  %v726_v8 = vpack.c.bf16 %v116_v7, %v115_v6  ;;  %v118_v11 = vld [vmem:[#allocation6 + $0x38] sm:$0xff]  ;;  %638 = vmatprep.mubr.f32.mxu0 %v95_v9  ;;  %v119_v13 = vld [vmem:[#allocation6 + $0x40] sm:$0xff]  ;;  %v120_v14 = vld [vmem:[#allocation6 + $0x48] sm:$0xff] }
  0x3a   :  { %721 = vmatpush3.bf16.msra.mxu0 %v718_v3  ;;  %v730_v12 = vpack.c.bf16 %v118_v11, %v117_v10  ;;  %v323_v15 = vld [vmem:[#allocation8] sm:$0xff]  ;;  %v324_v16 = vld [vmem:[#allocation8 + $0x8] sm:$0xff]  ;;  %v325_v17 = vld [vmem:[#allocation8 + $0x10] sm:$0xff]  ;;  %v734_v21 = vpack.c.bf16 %v120_v14, %v119_v13 }
  0x3b   :  { %723 = vmatprep.subr.bf16.mxu0 %v722_v5  ;;  %v326_v18 = vld [vmem:[#allocation8 + $0x18] sm:$0xff]  ;;  %v750_v19 = vpack.c.bf16 %v324_v16, %v323_v15  ;;  %v327_v22 = vld [vmem:[#allocation8 + $0x20] sm:$0xff]  ;;  %v328_v23 = vld [vmem:[#allocation8 + $0x28] sm:$0xff] }
  0x3c   :  { %v754_v20 = vpack.c.bf16 %v326_v18, %v325_v17  ;;  %v121_v24 = vld [vmem:[#allocation6 + $0x50] sm:$0xff]  ;;  %v122_v25 = vld [vmem:[#allocation6 + $0x58] sm:$0xff]  ;;  %v758_v26 = vpack.c.bf16 %v328_v23, %v327_v22  ;;  %v123_v30 = vld [vmem:[#allocation6 + $0x60] sm:$0xff] }
  0x3d   :  { %751 = vmatprep.subr.bf16.mxu1 %v750_v19  ;;  %v738_v27 = vpack.c.bf16 %v122_v25, %v121_v24  ;;  %v329_v28 = vld [vmem:[#allocation8 + $0x30] sm:$0xff]  ;;  %v330_v29 = vld [vmem:[#allocation8 + $0x38] sm:$0xff]  ;;  %v124_v31 = vld [vmem:[#allocation6 + $0x68] sm:$0xff] }
  0x3e   :  { %725 = vmatpush3.bf16.msra.mxu0 %v722_v5  ;;  %753 = vmatpush3.bf16.msra.mxu1 %v750_v19  ;;  %v762_v32 = vpack.c.bf16 %v330_v29, %v329_v28  ;;  %v742_v33 = vpack.c.bf16 %v124_v31, %v123_v30  ;;  %v331_v34 = vld [vmem:[#allocation8 + $0x40] sm:$0xff]  ;;  %v332_v35 = vld [vmem:[#allocation8 + $0x48] sm:$0xff]  ;;  %v125_v36 = vld [vmem:[#allocation6 + $0x70] sm:$0xff] }
  0x3f   :  { %727 = vmatprep.subr.bf16.mxu0 %v726_v8  ;;  %755 = vmatprep.subr.bf16.mxu1 %v754_v20  ;;  %v126_v37 = vld [vmem:[#allocation6 + $0x78] sm:$0xff]  ;;  %v766_v38 = vpack.c.bf16 %v332_v35, %v331_v34  ;;  %v333_v40 = vld [vmem:[#allocation8 + $0x50] sm:$0xff]  ;;  %v335_v43 = vld [vmem:[#allocation8 + $0x60] sm:$0xff] }
  0x40   :  { %v746_v39 = vpack.c.bf16 %v126_v37, %v125_v36  ;;  %v334_v41 = vld [vmem:[#allocation8 + $0x58] sm:$0xff]  ;;  %v336_v44 = vld [vmem:[#allocation8 + $0x68] sm:$0xff]  ;;  %v97_v47 = vld [vmem:[#allocation3 + $0x10] sm:$0xff] }
  0x41   :  { %v770_v42 = vpack.c.bf16 %v334_v41, %v333_v40  ;;  %v96_v45 = vld [vmem:[#allocation3 + $0x8] sm:$0xff]  ;;  %v774_v46 = vpack.c.bf16 %v336_v44, %v335_v43  ;;  %v337_v48 = vld [vmem:[#allocation8 + $0x70] sm:$0xff]  ;;  %v338_v49 = vld [vmem:[#allocation8 + $0x78] sm:$0xff] }
  0x42   :  { %729 = vmatpush3.bf16.msra.mxu0 %v726_v8  ;;  %757 = vmatpush3.bf16.msra.mxu1 %v754_v20  ;;  %v98_v50 = vld [vmem:[#allocation3 + $0x18] sm:$0xff]  ;;  %v778_v51 = vpack.c.bf16 %v338_v49, %v337_v48  ;;  %v99_v52 = vld [vmem:[#allocation3 + $0x20] sm:$0xff]  ;;  %v100_v53 = vld [vmem:[#allocation3 + $0x28] sm:$0xff] }
  0x43   :  { %731 = vmatprep.subr.bf16.mxu0 %v730_v12  ;;  %759 = vmatprep.subr.bf16.mxu1 %v758_v26  ;;  %v101_v54 = vld [vmem:[#allocation3 + $0x30] sm:$0xff]  ;;  %v102_v55 = vld [vmem:[#allocation3 + $0x38] sm:$0xff]  ;;  %v103_v56 = vld [vmem:[#allocation3 + $0x40] sm:$0xff] }
  0x44   :  { %v104_v57 = vld [vmem:[#allocation3 + $0x48] sm:$0xff]  ;;  %v105_v58 = vld [vmem:[#allocation3 + $0x50] sm:$0xff]  ;;  %v106_v59 = vld [vmem:[#allocation3 + $0x58] sm:$0xff] }
  0x45   :  { %v107_v60 = vld [vmem:[#allocation3 + $0x60] sm:$0xff]  ;;  %v108_v61 = vld [vmem:[#allocation3 + $0x68] sm:$0xff]  ;;  %v109_v62 = vld [vmem:[#allocation3 + $0x70] sm:$0xff] }
  0x46   :  { %733 = vmatpush3.bf16.msra.mxu0 %v730_v12  ;;  %761 = vmatpush3.bf16.msra.mxu1 %v758_v26  ;;  %v110_v63 = vld [vmem:[#allocation3 + $0x78] sm:$0xff]  ;;  %v541_v16 = vld [vmem:[%s986_s3] ss:$0 sm:$0xff]  ;;  %s887_s3 = smov [#allocation9]  }
  0x47   :  { %735 = vmatprep.subr.bf16.mxu0 %v734_v21  ;;  %763 = vmatprep.subr.bf16.mxu1 %v762_v32  ;;  %s528_s26 = sshll.u32 %s887_s3, 4  ;;  %s529_s26 = int_to_ptr.vmem [resolvable:$true] %s528_s26 }
  0x48   :  { %s854_s29 = scalar_lea.vmem %s529_s26, 2048  ;;  %p859_p11 = scmp.lt.s32.totalorder %s529_s26, %s529_s26 }
  0x49   :  { %p855_p10 = scmp.ne.s32.totalorder %s529_s26, %s854_s29  ;;  %p860_p12 = scmp.lt.s32.totalorder %s854_s29, %s854_s29 }
  0x4a   :  { %737 = vmatpush3.bf16.msra.mxu0 %v734_v21  ;;  %765 = vmatpush3.bf16.msra.mxu1 %v762_v32 }
  0x4b   :  { %739 = vmatprep.subr.bf16.mxu0 %v738_v27  ;;  %767 = vmatprep.subr.bf16.mxu1 %v766_v38  ;;  %p861_p13 = por %p860_p12, %p859_p11 }
  0x4d   :  { %p862_p0 = pnand %p861_p13, %p855_p10 }
  0x4e   :  { %741 = vmatpush3.bf16.msra.mxu0 %v738_v27  ;;  %769 = vmatpush3.bf16.msra.mxu1 %v766_v38 }
  0x4f   :  { %743 = vmatprep.subr.bf16.mxu0 %v742_v33  ;;  %771 = vmatprep.subr.bf16.mxu1 %v770_v42 }
  0x52   :  { %745 = vmatpush3.bf16.msra.mxu0 %v742_v33  ;;  %773 = vmatpush3.bf16.msra.mxu1 %v770_v42 }
  0x53   :  { %747 = vmatprep.subr.bf16.mxu0 %v746_v39  ;;  %775 = vmatprep.subr.bf16.mxu1 %v774_v46 }
  0x56   :  { %749 = vmatpush3.bf16.msra.mxu0 %v746_v39  ;;  %777 = vmatpush3.bf16.msra.mxu1 %v774_v46 }
  0x57   :  { %779 = vmatprep.subr.bf16.mxu1 %v778_v51 }
  0x59   :  { %639 = vmatmul.mubr.f32.vlgmr.msra.gmra.mrb[0].mxu0 %v96_v45 }
  0x5a   :  { %641 = vmatprep.mubr.f32.mxu0 %v97_v47  ;;  %781 = vmatpush3.bf16.msra.mxu1 %v778_v51 }
  0x5d   :  { %642 = vmatmul.mubr.f32.gmra.mrb[2].mxu0 %v98_v50 }
  0x5e   :  { %644 = vmatprep.mubr.f32.mxu0 %v99_v52 }
  0x61   :  { %645 = vmatmul.mubr.f32.gmra.mrb[4].mxu0 %v100_v53 }
  0x62   :  { %647 = vmatprep.mubr.f32.mxu0 %v101_v54 }
  0x65   :  { %648 = vmatmul.mubr.f32.gmra.mrb[6].mxu0 %v102_v55 }
  0x66   :  { %650 = vmatprep.mubr.f32.mxu0 %v103_v56 }
  0x69   :  { %651 = vmatmul.mubr.f32.gmra.mrb[8].mxu0 %v104_v57 }
  0x6a   :  { %653 = vmatprep.mubr.f32.mxu0 %v105_v58 }
  0x6d   :  { %654 = vmatmul.mubr.f32.gmra.mrb[10].mxu0 %v106_v59 }
  0x6e   :  { %656 = vmatprep.mubr.f32.mxu0 %v107_v60 }
  0x71   :  { %657 = vmatmul.mubr.f32.gmra.mrb[12].mxu0 %v108_v61 }
  0x72   :  { %659 = vmatprep.mubr.f32.mxu0 %v109_v62 }
  0x75   :  { %660 = vmatmul.mubr.f32.gmra.mrb[14].mxu0 %v110_v63 }
 0x12c   :  { %v640_v0 = vpop.f32.mrb[0].mxu0 }
 0x12d   :  { %v193_v1 = vpop.f32.mrb[1].mxu0 }
 0x12e   :  { %694 = vmatprep.mubr.f32.mxu1 %v193_v1 }
 0x12f   :  { %695 = vmatmul.mubr.f32.vlgmr.msra.gmra.mrb[0].mxu1 %v640_v0 }
 0x130   :  { %v643_v2 = vpop.f32.mrb[2].mxu0 }
 0x131   :  { %v203_v3 = vpop.f32.mrb[3].mxu0 }
 0x132   :  { %697 = vmatprep.mubr.f32.mxu1 %v203_v3 }
 0x133   :  { %698 = vmatmul.mubr.f32.gmra.mrb[2].mxu1 %v643_v2 }
 0x134   :  { %v646_v4 = vpop.f32.mrb[4].mxu0 }
 0x135   :  { %v213_v5 = vpop.f32.mrb[5].mxu0 }
 0x136   :  { %700 = vmatprep.mubr.f32.mxu1 %v213_v5 }
 0x137   :  { %701 = vmatmul.mubr.f32.gmra.mrb[4].mxu1 %v646_v4 }
 0x138   :  { %v649_v6 = vpop.f32.mrb[6].mxu0 }
 0x139   :  { %v223_v7 = vpop.f32.mrb[7].mxu0 }
 0x13a   :  { %703 = vmatprep.mubr.f32.mxu1 %v223_v7 }
 0x13b   :  { %704 = vmatmul.mubr.f32.gmra.mrb[6].mxu1 %v649_v6 }
 0x13c   :  { %v652_v8 = vpop.f32.mrb[8].mxu0 }
 0x13d   :  { %v233_v9 = vpop.f32.mrb[9].mxu0 }
 0x13e   :  { %706 = vmatprep.mubr.f32.mxu1 %v233_v9 }
 0x13f   :  { %707 = vmatmul.mubr.f32.gmra.mrb[8].mxu1 %v652_v8 }
 0x140   :  { %v655_v10 = vpop.f32.mrb[10].mxu0 }
 0x141   :  { %v243_v11 = vpop.f32.mrb[11].mxu0 }
 0x142   :  { %709 = vmatprep.mubr.f32.mxu1 %v243_v11 }
 0x143   :  { %710 = vmatmul.mubr.f32.gmra.mrb[10].mxu1 %v655_v10 }
 0x144   :  { %v658_v12 = vpop.f32.mrb[12].mxu0 }
 0x145   :  { %v253_v13 = vpop.f32.mrb[13].mxu0 }
 0x146   :  { %712 = vmatprep.mubr.f32.mxu1 %v253_v13 }
 0x147   :  { %713 = vmatmul.mubr.f32.gmra.mrb[12].mxu1 %v658_v12 }
 0x148   :  { %v661_v14 = vpop.f32.mrb[14].mxu0 }
 0x149   :  { %v263_v15 = vpop.f32.mrb[15].mxu0 }
 0x14a   :  { %715 = vmatprep.mubr.f32.mxu1 %v263_v15 }
 0x14b   :  { %716 = vmatmul.mubr.f32.gmra.mrb[14].mxu1 %v661_v14 }
 0x202   :  { %v696_v17 = vpop.f32.mrb[0].mxu1 }
 0x203   :  { %v418_v18 = vadd.f32 %v696_v17, %v541_v16  ;;  %v412_v19 = vpop.f32.mrb[1].mxu1 }
 0x204   :  { %v413_v20 = vadd.f32 %v541_v16, %v412_v19 }
 0x205   :  { %v492_v21 = vmax.f32 %v418_v18, 0.0 }
 0x206   :  { %v491_v22 = vmax.f32 %v413_v20, 0.0  ;;  %v699_v23 = vpop.f32.mrb[2].mxu1 }
 0x207   :  { %508 = vst [vmem:[#allocation9 + $0x8] sm:$0xff] %v492_v21  ;;  %v428_v24 = vadd.f32 %v699_v23, %v541_v16  ;;  %v422_v25 = vpop.f32.mrb[3].mxu1 }
 0x208   :  { %507 = vst [vmem:[#allocation9] sm:$0xff] %v491_v22  ;;  %v423_v26 = vadd.f32 %v541_v16, %v422_v25 }
 0x209   :  { %v494_v27 = vmax.f32 %v428_v24, 0.0 }
 0x20a   :  { %v493_v28 = vmax.f32 %v423_v26, 0.0  ;;  %v702_v29 = vpop.f32.mrb[4].mxu1 }
 0x20b   :  { %510 = vst [vmem:[#allocation9 + $0x18] sm:$0xff] %v494_v27  ;;  %v438_v30 = vadd.f32 %v702_v29, %v541_v16  ;;  %v432_v31 = vpop.f32.mrb[5].mxu1 }
 0x20c   :  { %509 = vst [vmem:[#allocation9 + $0x10] sm:$0xff] %v493_v28  ;;  %v433_v32 = vadd.f32 %v541_v16, %v432_v31 }
 0x20d   :  { %v496_v33 = vmax.f32 %v438_v30, 0.0 }
 0x20e   :  { %v495_v34 = vmax.f32 %v433_v32, 0.0  ;;  %v705_v35 = vpop.f32.mrb[6].mxu1 }
 0x20f   :  { %512 = vst [vmem:[#allocation9 + $0x28] sm:$0xff] %v496_v33  ;;  %v448_v36 = vadd.f32 %v705_v35, %v541_v16  ;;  %v442_v37 = vpop.f32.mrb[7].mxu1 }
 0x210   :  { %511 = vst [vmem:[#allocation9 + $0x20] sm:$0xff] %v495_v34  ;;  %v443_v38 = vadd.f32 %v541_v16, %v442_v37 }
 0x211   :  { %v498_v39 = vmax.f32 %v448_v36, 0.0 }
 0x212   :  { %v497_v40 = vmax.f32 %v443_v38, 0.0  ;;  %v708_v41 = vpop.f32.mrb[8].mxu1 }
 0x213   :  { %514 = vst [vmem:[#allocation9 + $0x38] sm:$0xff] %v498_v39  ;;  %v458_v42 = vadd.f32 %v708_v41, %v541_v16  ;;  %v452_v43 = vpop.f32.mrb[9].mxu1 }
 0x214   :  { %513 = vst [vmem:[#allocation9 + $0x30] sm:$0xff] %v497_v40  ;;  %v453_v44 = vadd.f32 %v541_v16, %v452_v43 }
 0x215   :  { %v500_v45 = vmax.f32 %v458_v42, 0.0 }
 0x216   :  { %v499_v46 = vmax.f32 %v453_v44, 0.0  ;;  %v711_v47 = vpop.f32.mrb[10].mxu1 }
 0x217   :  { %516 = vst [vmem:[#allocation9 + $0x48] sm:$0xff] %v500_v45  ;;  %v468_v48 = vadd.f32 %v711_v47, %v541_v16  ;;  %v462_v49 = vpop.f32.mrb[11].mxu1 }
 0x218   :  { %515 = vst [vmem:[#allocation9 + $0x40] sm:$0xff] %v499_v46  ;;  %v463_v50 = vadd.f32 %v541_v16, %v462_v49 }
 0x219   :  { %v502_v51 = vmax.f32 %v468_v48, 0.0 }
 0x21a   :  { %v501_v52 = vmax.f32 %v463_v50, 0.0  ;;  %v714_v53 = vpop.f32.mrb[12].mxu1 }
 0x21b   :  { %518 = vst [vmem:[#allocation9 + $0x58] sm:$0xff] %v502_v51  ;;  %v478_v54 = vadd.f32 %v714_v53, %v541_v16  ;;  %v472_v55 = vpop.f32.mrb[13].mxu1 }
 0x21c   :  { %517 = vst [vmem:[#allocation9 + $0x50] sm:$0xff] %v501_v52  ;;  %v473_v56 = vadd.f32 %v541_v16, %v472_v55 }
 0x21d   :  { %v504_v57 = vmax.f32 %v478_v54, 0.0 }
 0x21e   :  { %v503_v58 = vmax.f32 %v473_v56, 0.0  ;;  %v717_v59 = vpop.f32.mrb[14].mxu1 }
 0x21f   :  { %520 = vst [vmem:[#allocation9 + $0x68] sm:$0xff] %v504_v57  ;;  %v488_v60 = vadd.f32 %v717_v59, %v541_v16  ;;  %v482_v61 = vpop.f32.mrb[15].mxu1 }
 0x220   :  { %519 = vst [vmem:[#allocation9 + $0x60] sm:$0xff] %v503_v58  ;;  %v483_v62 = vadd.f32 %v541_v16, %v482_v61 }
 0x221   :  { %v506_v63 = vmax.f32 %v488_v60, 0.0 }
 0x222   :  { %v505_v0 = vmax.f32 %v483_v62, 0.0 }
 0x223   :  { %522 = vst [vmem:[#allocation9 + $0x78] sm:$0xff] %v506_v63 }
 0x224   :  { %521 = vst [vmem:[#allocation9 + $0x70] sm:$0xff] %v505_v0 }
 0x225   :  { %865 = shalt.err (!%p862_p0)
}
 0x226   :  { %s866_s6 = scalar_lea.hbm %s987_s4, 2048 }
 0x227   :  { %p867_p1 = scmp.ne.s32.totalorder %s987_s4, %s866_s6  ;;  %p870_p2 = scmp.lt.u32.totalorder %s866_s6, %s987_s4 }
 0x229   :  { %p872_p3 = pnand %p870_p2, %p867_p1 }
 0x22b   :  { %875 = shalt.err (!%p872_p3)
}
 0x22c   :  { %534 = dma.vmem_to_hbm [thread:$0]  %s529_s26, 2048, %s987_s4, [#allocation5], %s884_s27, %s884_s27, %s885_s28  }
 0x22d   :  { %880 = dma.done.wait [#allocation5], 2048  }
 0x22e   :  { %881 = vsyncadd [#allocation5], 4294965248 }
 0x22f   :  { %538 = vsyncpa [#allocation4], 1 }
 0x230   :  { %539 = vsyncpa [#allocation7], 1 }
 0x231   :  { %540 = vsyncpa [#allocation5], 1 }

</bundles_post_ra>
